<compile_context>
chip_gen: v7x
topology: tpu7x:2x2x1
jax: 0.10.0
libtpu: 0.0.40
codegen_flags: <defaults>
</compile_context>

<pallas_src>
import functools

import jax
import jax.numpy as jnp
from jax import lax
from jax.experimental import pallas as pl
from jax.experimental.pallas import tpu as pltpu

_LANE = 128
_SUBLANE = 8
_MAX_TL = 8192  # bounds the static fold unroll to <= 64 lane groups


def _round_up(v, m):
    return ((v + m - 1) // m) * m


def _round_down(v, m):
    return (v // m) * m


def _vmem_capacity_bytes():
    try:
        info = pltpu.get_tpu_info()
        cap = getattr(info, "vmem_capacity_bytes", None)
        if cap:
            return int(cap)
    except Exception:
        pass
    return 64 << 20  # conservative (v7x per-TensorCore)


def _block_target_bytes(vmem_cap):
    # ~8 MiB blocks on 128 MiB-VMEM chips (v5e/v6e), ~4 MiB on v7x (64 MiB TC),
    # so 2 pipeline buffers + scratch stay far below the physical limit.
    return (8 << 20) if vmem_cap >= (100 << 20) else (4 << 20)


def _choose_tl(l, itemsize, target):
    # Prefer a single full-L chunk whenever >= 8 rows of full L fit the budget.
    if _SUBLANE * l * itemsize <= target:
        return l
    tl = _round_down(target // (_SUBLANE * itemsize), _LANE)
    tl = min(tl, _MAX_TL, _round_down(l, _LANE))
    return max(tl, _LANE)


def _choose_tr(r, tl, itemsize, target):
    tr = _round_down(max(target // max(tl * itemsize, 1), _SUBLANE), _SUBLANE)
    if tr >= r:
        tr = r
        # Keep at least two row blocks when R allows so the "parallel" row
        # axis can shard across v7x's two TensorCores (cheap elsewhere).
        if r > 2 * _SUBLANE:
            tr = _round_up(pl.cdiv(r, 2), _SUBLANE)
    return tr


def _vmem_limit(need_bytes, vmem_cap):
    cap = min(40 << 20, (vmem_cap * 3) // 5)
    return int(min(max(need_bytes + (2 << 20), 4 << 20), cap))


def _single_chunk_kernel(x_ref, o_ref):
    # Full L in one block: reduce straight into the output (no scratch, no
    # extra VMEM round trip).
    o_ref[...] = jnp.max(x_ref[...], axis=-1, keepdims=True).astype(o_ref.dtype)


def _multi_chunk_kernel(x_ref, o_ref, acc_ref, *, seq_len, tl, acc_w,
                        needs_mask, neutral):
    # Grid = (row_tiles, l_chunks); the L-chunk axis (last) is the reduction.
    k = pl.program_id(1)
    nk = pl.num_programs(1)

    def fold(xx):
        # Fold the tl // acc_w lane groups with elementwise max: pure VPU work
        # on aligned 128-wide slices (no reshape, no XLU, no relayout).
        part = xx[:, 0:acc_w]
        for g in range(1, tl // acc_w):
            part = jnp.maximum(part, xx[:, g * acc_w:(g + 1) * acc_w])
        return part

    @pl.when(k == 0)
    def _():
        # First chunk (never the last since nk >= 2): init by copy, unmasked.
        acc_ref[...] = fold(x_ref[...])

    @pl.when(jnp.logical_and(k > 0, k < nk - 1))
    def _():
        # Interior chunks: unmasked elementwise running max into (tr, acc_w).
        acc_ref[...] = jnp.maximum(acc_ref[...], fold(x_ref[...]))

    @pl.when(k == nk - 1)
    def _():
        x = x_ref[...]
        if needs_mask:
            # Tail mask only on the (possibly partial) last chunk.
            col = lax.broadcasted_iota(jnp.int32, x.shape, dimension=1)
            x = jnp.where(k * tl + col < seq_len, x, neutral)
        part = jnp.maximum(acc_ref[...], fold(x))
        # Single cross-lane reduction (XLU) per output row tile.
        o_ref[...] = jnp.max(part, axis=-1, keepdims=True).astype(o_ref.dtype)


def max_pool(x, *, tr=None, tl=None):
    """Pallas TPU implementation of F.max_pool1d(x, kernel_size=x.shape[2]).

    Args:
      x: (N, C, L) array.
      tr, tl: optional tile-size overrides (must satisfy TPU block rules;
        tl must be a multiple of 128 when tl < L).
    Returns:
      (N, C, 1) array, same dtype as x.
    """
    n, c, l = x.shape
    r = n * c
    xf = x.reshape(r, l)            # layout plumbing stays outside the kernel
    itemsize = x.dtype.itemsize

    vmem_cap = _vmem_capacity_bytes()
    target = _block_target_bytes(vmem_cap)

    if tl is None:
        tl = _choose_tl(l, itemsize, target)
    else:
        tl = int(tl)
    grid_l = pl.cdiv(l, tl)
    if grid_l == 1:
        tl = l                       # full-L block: no masking, no scratch
    if tr is None:
        tr = _choose_tr(r, tl, itemsize, target)
    else:
        tr = int(tr)
    grid_r = pl.cdiv(r, tr)

    if jnp.issubdtype(x.dtype, jnp.floating):
        neutral = float("-inf")      # exact PyTorch semantics for all--inf rows
    else:
        neutral = int(jnp.iinfo(x.dtype).min)

    cost = pl.CostEstimate(
        flops=r * l,                 # one compare per element
        transcendentals=0,
        bytes_accessed=r * l * itemsize + r * itemsize)

    in_block = tr * tl * itemsize

    if grid_l == 1:
        vmem_limit = _vmem_limit(2 * in_block + 2 * tr * itemsize, vmem_cap)
        out_flat = pl.pallas_call(
            _single_chunk_kernel,
            out_shape=jax.ShapeDtypeStruct((r, 1), x.dtype),
            grid=(grid_r,),
            in_specs=[pl.BlockSpec((tr, tl), lambda i: (i, 0))],
            out_specs=pl.BlockSpec((tr, 1), lambda i: (i, 0)),
            compiler_params=pltpu.CompilerParams(
                dimension_semantics=("parallel",),
                vmem_limit_bytes=vmem_limit),
            cost_estimate=cost,
        )(xf)
    else:
        acc_w = _LANE if tl % _LANE == 0 else tl
        needs_mask = (l % tl) != 0
        kernel = functools.partial(
            _multi_chunk_kernel, seq_len=l, tl=tl, acc_w=acc_w,
            needs_mask=needs_mask, neutral=neutral)
        acc_bytes = tr * acc_w * itemsize
        vmem_limit = _vmem_limit(2 * in_block + acc_bytes + 2 * tr * itemsize,
                                 vmem_cap)
        out_flat = pl.pallas_call(
            kernel,
            out_shape=jax.ShapeDtypeStruct((r, 1), x.dtype),
            grid=(grid_r, grid_l),
            in_specs=[pl.BlockSpec((tr, tl), lambda i, k: (i, k))],
            out_specs=pl.BlockSpec((tr, 1), lambda i, k: (i, 0)),
            scratch_shapes=[pltpu.VMEM((tr, acc_w), x.dtype)],
            compiler_params=pltpu.CompilerParams(
                dimension_semantics=("parallel", "arbitrary"),
                vmem_limit_bytes=vmem_limit),
            cost_estimate=cost,
        )(xf)

    return out_flat.reshape(n, c, 1)


if __name__ == "__main__":
    key = jax.random.PRNGKey(0)
    k0, k1, k2 = jax.random.split(key, 3)

    # Primary check: small shape consistent with the module (batch=2,
    # channels=4, seq=16) -> single-chunk fast path.
    x = jax.random.normal(k0, (2, 4, 16), dtype=jnp.float32)
    out = jax.block_until_ready(max_pool(x))
    ref = jnp.max(x, axis=-1, keepdims=True)
    assert out.shape == (2, 4, 1), out.shape
    assert out.dtype == x.dtype
    assert jnp.allclose(out, ref), "mismatch vs reference (fast path)"

    # Multi-chunk reduction grid with a partial, masked last L-chunk
    # (L=300 split into 128-wide chunks).
    x2 = jax.random.normal(k1, (2, 4, 300), dtype=jnp.float32)
    out2 = jax.block_until_ready(max_pool(x2, tl=128))
    ref2 = jnp.max(x2, axis=-1, keepdims=True)
    assert out2.shape == (2, 4, 1), out2.shape
    assert jnp.allclose(out2, ref2), "mismatch vs reference (tiled/masked path)"

    # bf16 path with lane-group folding (tl=256 -> 2 groups of 128) and a
    # masked partial last chunk; exercises the no-f32-widening accumulator.
    x3 = jax.random.normal(k2, (2, 4, 520), dtype=jnp.bfloat16)
    out3 = jax.block_until_ready(max_pool(x3, tl=256))
    ref3 = jnp.max(x3, axis=-1, keepdims=True)
    assert out3.shape == (2, 4, 1), out3.shape
    assert out3.dtype == jnp.bfloat16
    assert jnp.array_equal(out3, ref3), "mismatch vs reference (bf16 fold path)"

    print("KERNEL_OK")
</pallas_src>

<mosaic_0001>
module attributes {stable_mosaic.version = 11 : i64} {
  func.func @_single_chunk_kernel(%arg0: i32, %arg1: memref<8x16xf32, #tpu.memory_space<vmem>>, %arg2: memref<8x1xf32, #tpu.memory_space<vmem>>) attributes {dimension_semantics = [#tpu.dimension_semantics<parallel>], iteration_bounds = array<i64: 1>, scalar_prefetch = 0 : i64, scratch_operands = 0 : i64, tpu.core_type = #tpu.core_type<tc>, window_params = [{transform_indices = @transform_0, window_bounds = array<i64: 8, 16>}, {transform_indices = @transform_1, window_bounds = array<i64: 8, 1>}]} {
    %c0 = arith.constant 0 : index
    %c0_0 = arith.constant 0 : index
    %0 = vector.load %arg1[%c0, %c0_0] : memref<8x16xf32, #tpu.memory_space<vmem>>, vector<8x16xf32>
    %cst = arith.constant dense<0xFF800000> : vector<8xf32>
    %1 = vector.multi_reduction <maximumf>, %0, %cst [1] : vector<8x16xf32> to vector<8xf32>
    %2 = vector.shape_cast %1 : vector<8xf32> to vector<8x1xf32>
    %c0_1 = arith.constant 0 : index
    %c0_2 = arith.constant 0 : index
    %3 = vector.load %arg2[%c0_1, %c0_2] : memref<8x1xf32, #tpu.memory_space<vmem>>, vector<8x1xf32>
    tpu.vector_store %arg2[%c0_1, %c0_2], %2 {strides = array<i32>} : memref<8x1xf32, #tpu.memory_space<vmem>>, vector<8x1xf32>,
    return
  }
  func.func @transform_0(%arg0: i32) -> (i32, i32) {
    %c0_i32 = arith.constant 0 : i32
    %c0_i32_0 = arith.constant 0 : i32
    return %arg0, %c0_i32 : i32, i32
  }
  func.func @transform_1(%arg0: i32) -> (i32, i32) {
    %c0_i32 = arith.constant 0 : i32
    %c0_i32_0 = arith.constant 0 : i32
    return %arg0, %c0_i32 : i32, i32
  }
}

</mosaic_0001>

<bundles_post_ra>
// kernel: tpu_custom_call.1
= control target key start
LH: loop header
LB: loop body
LE: loop exit
PB: predicated region body
PF: predicated region fallthrough
CT: control target
= control target key end

     0   :  { %6 = vsyncpa [#allocation3], 0  ;;  %s57_s6 = smov [#allocation2]   ;;  %s83_s0 = inlined_call_operand.hbm [shape: f32[8,16], index: 0, kind: input, shape index: {}]   ;;  %s84_s1 = inlined_call_operand.vmem [shape: f32[8,1], index: 1, kind: output, shape index: {}]  }
   0x1   :  { %s13_s7 = sshll.u32 %s57_s6, 4  ;;  %s33_s10 = scalar_lea.hbm %s83_s0, 128  ;;  %s14_s7 = int_to_ptr.vmem [resolvable:$true] %s13_s7 }
   0x2   :  { %p34_p0 = scmp.ne.s32.totalorder %s83_s0, %s33_s10  ;;  %p37_p1 = scmp.lt.u32.totalorder %s33_s10, %s83_s0 }
   0x4   :  { %p39_p2 = pnand %p37_p1, %p34_p0 }
   0x6   :  { %42 = shalt.err (!%p39_p2)
}
   0x7   :  { %s43_s15 = scalar_lea.vmem %s14_s7, 128  ;;  %p48_p4 = scmp.lt.s32.totalorder %s14_s7, %s14_s7 }
   0x8   :  { %p44_p3 = scmp.ne.s32.totalorder %s14_s7, %s43_s15  ;;  %p49_p5 = scmp.lt.s32.totalorder %s43_s15, %s43_s15 }
   0xa   :  { %p50_p6 = por %p49_p5, %p48_p4 }
   0xc   :  { %p51_p7 = pnand %p50_p6, %p44_p3 }
   0xe   :  { %54 = shalt.err (!%p51_p7)
}
   0xf   :  { %16 = dma.hbm_to_vmem [thread:$0]  %s83_s0, 128, %s14_s7, [#allocation3]  }
  0x10   :  { %55 = dma.done.wait [#allocation3], 128  }
  0x11   :  { %56 = vsyncadd [#allocation3], 4294967168  ;;  %vm21_vm0 = vcmask 130048   ;;  %v20_v0 = vld [vmem:[#allocation2] sm:$0xff]  ;;  %vm25_vm1 = vcmask 7168  }
  0x12   :  { %v22_v1 = vsel %vm21_vm0, %v20_v0, -inf }
  0x13   :  { %23 = vmax.xlane.f32.xlu0 %v22_v1 }
  0xa0   :  { %v24_v2 = vpop.xlane.xlu0 %23 }
  0xa1   :  { %26 = vst.msk [vmem:[%s84_s1] sm:$0xff] %vm25_vm1, %v24_v2 }
  0xa2   :  { %31 = vsyncpa [#allocation3], 1 }

</bundles_post_ra>
